<compile_context>
chip_gen: v5e
topology: v5e:2x2
jax: 0.10.0
libtpu: 0.0.40
codegen_flags: <defaults>
</compile_context>

<pallas_src>
import math

import jax
import jax.numpy as jnp
from jax.experimental import pallas as pl
from jax.experimental.pallas import tpu as pltpu


# -----------------------------------------------------------------------------
# Schedules (plain-JAX glue; mirrors cosine_beta_schedule / ddpm_schedules).
# Reference computes the cosine schedule in float64 then casts; f32 here.
# -----------------------------------------------------------------------------
def cosine_beta_schedule(timesteps, s=0.008):
    steps = timesteps + 1
    t = jnp.linspace(0.0, timesteps, steps, dtype=jnp.float32) / timesteps
    alphas_cumprod = jnp.cos((t + s) / (1 + s) * math.pi * 0.5) ** 2
    alphas_cumprod = alphas_cumprod / alphas_cumprod[0]
    betas = 1.0 - alphas_cumprod[1:] / alphas_cumprod[:-1]
    return jnp.clip(betas, 0.0, 0.999)


def ddpm_schedules(beta1, beta2, T):
    beta_t = cosine_beta_schedule(T).astype(jnp.float32)
    alpha_t = 1.0 - beta_t
    alphabar_t = jnp.exp(jnp.cumsum(jnp.log(alpha_t)))
    return {"sqrtab": jnp.sqrt(alphabar_t),
            "sqrtmab": jnp.sqrt(1.0 - alphabar_t)}


# -----------------------------------------------------------------------------
# Kernel 1: batch statistics of args[0] over dim 0 (torch.mean / torch.var,
# unbiased).  Operates on a lane-dense (N, S*H) view, tiled over the S*H axis
# (parallel grid), one-pass sum / sum-of-squares.
# -----------------------------------------------------------------------------
def _batch_stats_kernel(a_ref, mean_ref, var_ref):
    a = a_ref[...]                                        # [N, TILE] f32
    n = a.shape[0]
    s = jnp.sum(a, axis=0, keepdims=True)
    sq = jnp.sum(a * a, axis=0, keepdims=True)
    mean = s * (1.0 / n)
    var = (sq - n * mean * mean) * (1.0 / (n - 1))
    mean_ref[...] = mean
    var_ref[...] = var


def batch_stats_pallas(args0):
    N, S, H = args0.shape
    assert N >= 2, "unbiased variance needs at least 2 samples along dim 0"
    F = S * H
    a2d = args0.reshape(N, F)
    tile = F
    for cand in (2048, 1024, 512, 256, 128):
        if F % cand == 0:
            tile = cand
            break
    mean, var = pl.pallas_call(
        _batch_stats_kernel,
        out_shape=(jax.ShapeDtypeStruct((1, F), jnp.float32),
                   jax.ShapeDtypeStruct((1, F), jnp.float32)),
        grid=(F // tile,),
        in_specs=[pl.BlockSpec((N, tile), lambda i: (0, i))],
        out_specs=(pl.BlockSpec((1, tile), lambda i: (0, i)),
                   pl.BlockSpec((1, tile), lambda i: (0, i))),
        compiler_params=pltpu.CompilerParams(
            dimension_semantics=("parallel",),
            vmem_limit_bytes=32 * 1024 * 1024),
    )(a2d)
    return mean.reshape(1, S, H), var.reshape(1, S, H)


# -----------------------------------------------------------------------------
# Kernel 2: fused DDPM step, gridded over batch.
#   x        = x_in @ enc_w + enc_b                    (MXU, bf16 x bf16 -> f32)
#   noise    = mean + var * z       (reference passes the *variance* as the
#                                    np.random.normal scale; reproduced exactly)
#   x_t      = sqrtab[ts] * x + sqrtmab[ts] * noise    (f32 VPU)
#   down     = relu(x_t @ wd + bd) + times             (MXU)
#   up       = relu(down @ wu + bu)                    (MXU)
#   output   = up @ wo + bo                            (MXU)
# sqrtab[ts], sqrtmab[ts], times arrive via SMEM scalar prefetch.
# -----------------------------------------------------------------------------
def _ddpm_fused_kernel(sa_ref, sm_ref, t_ref,                    # SMEM scalars
                       xin_ref, z_ref, mean_ref, var_ref,
                       ew_ref, eb_ref, wd_ref, bd_ref,
                       wu_ref, bu_ref, wo_ref, bo_ref,
                       out_ref, down_ref, up_ref, noise_ref, xenc_ref):
    b = pl.program_id(0)
    sa = sa_ref[b]
    sm = sm_ref[b]
    tt = t_ref[b]

    # encoder linear
    x = (jnp.dot(xin_ref[...].astype(jnp.bfloat16), ew_ref[...],
                 preferred_element_type=jnp.float32) + eb_ref[...])
    xenc_ref[...] = x

    # noise construction (mean/var broadcast over the batch dim)
    noise = mean_ref[...] + var_ref[...] * z_ref[...]
    noise_ref[...] = noise

    # forward diffusion mix (f32 elementwise)
    x_t = sa * x + sm * noise

    # time-conditioned MLP stand-in for nn_model
    down = jnp.maximum(
        jnp.dot(x_t.astype(jnp.bfloat16), wd_ref[...],
                preferred_element_type=jnp.float32) + bd_ref[...], 0.0) + tt
    down_ref[...] = down
    up = jnp.maximum(
        jnp.dot(down.astype(jnp.bfloat16), wu_ref[...],
                preferred_element_type=jnp.float32) + bu_ref[...], 0.0)
    up_ref[...] = up
    out_ref[...] = (jnp.dot(up.astype(jnp.bfloat16), wo_ref[...],
                            preferred_element_type=jnp.float32) + bo_ref[...])


def ddpm_fused_pallas(x_in, z, mean, var, sa, sm, times, params):
    B, S, D_in = x_in.shape
    H = params["enc_w"].shape[1]
    Hd = params["wd"].shape[1]
    Hu = params["wu"].shape[1]
    Ho = params["wo"].shape[1]

    def row_spec(d):      # per-batch (S, d) block, batch dim squeezed
        return pl.BlockSpec((None, S, d), lambda b, *_: (b, 0, 0))

    def bc_spec(d):       # broadcast (S, d) block (mean / var)
        return pl.BlockSpec((None, S, d), lambda b, *_: (0, 0, 0))

    def w_spec(k, n):     # weight block, constant index -> VMEM resident
        return pl.BlockSpec((k, n), lambda b, *_: (0, 0))

    grid_spec = pltpu.PrefetchScalarGridSpec(
        num_scalar_prefetch=3,
        grid=(B,),
        in_specs=[
            row_spec(D_in),                      # x_in
            row_spec(H),                         # z
            bc_spec(H),                          # mean
            bc_spec(H),                          # var
            w_spec(D_in, H), w_spec(1, H),       # encoder
            w_spec(H, Hd), w_spec(1, Hd),        # nn_model down
            w_spec(Hd, Hu), w_spec(1, Hu),       # nn_model up
            w_spec(Hu, Ho), w_spec(1, Ho),       # nn_model out
        ],
        out_specs=(
            row_spec(Ho),                        # output
            row_spec(Hd),                        # down
            row_spec(Hu),                        # up
            row_spec(H),                         # noise
            row_spec(H),                         # x (encoder output)
        ),
    )

    return pl.pallas_call(
        _ddpm_fused_kernel,
        out_shape=(jax.ShapeDtypeStruct((B, S, Ho), jnp.float32),
                   jax.ShapeDtypeStruct((B, S, Hd), jnp.float32),
                   jax.ShapeDtypeStruct((B, S, Hu), jnp.float32),
                   jax.ShapeDtypeStruct((B, S, H), jnp.float32),
                   jax.ShapeDtypeStruct((B, S, H), jnp.float32)),
        grid_spec=grid_spec,
        compiler_params=pltpu.CompilerParams(
            dimension_semantics=("parallel",),
            vmem_limit_bytes=32 * 1024 * 1024),
    )(sa, sm, times,
      x_in, z, mean, var,
      params["enc_w"].astype(jnp.bfloat16), params["enc_b"].reshape(1, H),
      params["wd"].astype(jnp.bfloat16), params["bd"].reshape(1, Hd),
      params["wu"].astype(jnp.bfloat16), params["bu"].reshape(1, Hu),
      params["wo"].astype(jnp.bfloat16), params["bo"].reshape(1, Ho))


# -----------------------------------------------------------------------------
# DDPM.forward
# -----------------------------------------------------------------------------
def _sample(key, B, S, H, n_T):
    k_ts, k_noise = jax.random.split(key)
    _ts = jax.random.randint(k_ts, (B,), 1, n_T)          # torch.randint(1, n_T)
    z = jax.random.normal(k_noise, (B, S, H), jnp.float32)
    return _ts, z


def ddpm_forward(x_in, args0, key, params, sched, n_T):
    B, S, _ = x_in.shape
    H = params["enc_w"].shape[1]

    _ts, z = _sample(key, B, S, H, n_T)
    sa = sched["sqrtab"][_ts].astype(jnp.float32)
    sm = sched["sqrtmab"][_ts].astype(jnp.float32)
    times = _ts.astype(jnp.float32) / n_T

    mean, var = batch_stats_pallas(args0)

    output, down, up, noise, x_enc = ddpm_fused_pallas(
        x_in, z, mean, var, sa, sm, times, params)
    return output, down, up, noise, x_enc


# -----------------------------------------------------------------------------
# Pure-JAX reference (same bf16-matmul convention) for a correctness check.
# -----------------------------------------------------------------------------
def ddpm_reference(x_in, args0, z, _ts, params, sched, n_T):
    B, S, D_in = x_in.shape

    def mm(a, w, bias):
        return (jnp.dot(a.astype(jnp.bfloat16), w.astype(jnp.bfloat16),
                        preferred_element_type=jnp.float32) + bias)

    x = mm(x_in.reshape(B * S, D_in), params["enc_w"],
           params["enc_b"]).reshape(B, S, -1)
    mean = jnp.mean(args0, axis=0, keepdims=True)
    var = jnp.var(args0, axis=0, ddof=1, keepdims=True)
    noise = mean + var * z
    sa = sched["sqrtab"][_ts].reshape(B, 1, 1)
    sm = sched["sqrtmab"][_ts].reshape(B, 1, 1)
    x_t = sa * x + sm * noise
    times = _ts.astype(jnp.float32) / n_T
    h = x_t.reshape(B * S, -1)
    down = jnp.maximum(mm(h, params["wd"], params["bd"]), 0.0)
    down = down + jnp.repeat(times, S)[:, None]
    up = jnp.maximum(mm(down, params["wu"], params["bu"]), 0.0)
    out = mm(up, params["wo"], params["bo"])
    return (out.reshape(B, S, -1), down.reshape(B, S, -1),
            up.reshape(B, S, -1), noise, x)


# -----------------------------------------------------------------------------
if __name__ == "__main__":
    # small, lane-dense toy shapes consistent with the (batch, seq, feature)
    # latent the forward implies
    B, S, D_in = 4, 64, 128
    H = Hd = Hu = Ho = 128
    N_args, n_T = 4, 10

    root = jax.random.PRNGKey(0)
    ks = jax.random.split(root, 8)

    params = {
        "enc_w": jax.random.normal(ks[2], (D_in, H), jnp.float32) / math.sqrt(D_in),
        "enc_b": jnp.zeros((H,), jnp.float32),
        "wd": jax.random.normal(ks[3], (H, Hd), jnp.float32) / math.sqrt(H),
        "bd": jnp.zeros((Hd,), jnp.float32),
        "wu": jax.random.normal(ks[4], (Hd, Hu), jnp.float32) / math.sqrt(Hd),
        "bu": jnp.zeros((Hu,), jnp.float32),
        "wo": jax.random.normal(ks[5], (Hu, Ho), jnp.float32) / math.sqrt(Hu),
        "bo": jnp.zeros((Ho,), jnp.float32),
    }

    x_in = jax.random.normal(ks[0], (B, S, D_in), jnp.float32)
    args0 = jax.random.normal(ks[1], (N_args, S, H), jnp.float32)
    sched = ddpm_schedules(1e-4, 0.02, n_T)

    out = ddpm_forward(x_in, args0, ks[6], params, sched, n_T)
    out = jax.block_until_ready(out)
    output, down, up, noise, x_enc = out

    # correctness check against a pure-JAX reference (same RNG draws)
    _ts, z = _sample(ks[6], B, S, H, n_T)
    ref = ddpm_reference(x_in, args0, z, _ts, params, sched, n_T)
    names = ("output", "down", "up", "noise", "x_enc")
    for name, got, want in zip(names, out, ref):
        assert got.shape == want.shape, name
        assert bool(jnp.all(jnp.isfinite(got))), name
        assert bool(jnp.allclose(got, want, rtol=5e-2, atol=5e-2)), name

    assert output.shape == (B, S, Ho)
    assert down.shape == (B, S, Hd)
    assert up.shape == (B, S, Hu)
    assert noise.shape == (B, S, H)
    assert x_enc.shape == (B, S, H)
    print("KERNEL_OK")
</pallas_src>

<mosaic_0001>
module attributes {stable_mosaic.version = 11 : i64} {
  func.func @_batch_stats_kernel(%arg0: i32, %arg1: memref<4x2048xf32, #tpu.memory_space<vmem>>, %arg2: memref<1x2048xf32, #tpu.memory_space<vmem>>, %arg3: memref<1x2048xf32, #tpu.memory_space<vmem>>) attributes {dimension_semantics = [#tpu.dimension_semantics<parallel>], iteration_bounds = array<i64: 4>, scalar_prefetch = 0 : i64, scratch_operands = 0 : i64, tpu.core_type = #tpu.core_type<tc>, window_params = [{transform_indices = @transform_0, window_bounds = array<i64: 4, 2048>}, {transform_indices = @transform_1, window_bounds = array<i64: 1, 2048>}, {transform_indices = @transform_2, window_bounds = array<i64: 1, 2048>}]} {
    %c0 = arith.constant 0 : index
    %c0_0 = arith.constant 0 : index
    %0 = vector.load %arg1[%c0, %c0_0] : memref<4x2048xf32, #tpu.memory_space<vmem>>, vector<4x2048xf32>
    %cst = arith.constant dense<0.000000e+00> : vector<2048xf32>
    %1 = vector.multi_reduction <add>, %0, %cst [0] : vector<4x2048xf32> to vector<2048xf32>
    %2 = vector.shape_cast %1 : vector<2048xf32> to vector<1x2048xf32>
    %3 = arith.mulf %0, %0 : vector<4x2048xf32>
    %cst_1 = arith.constant dense<0.000000e+00> : vector<2048xf32>
    %4 = vector.multi_reduction <add>, %3, %cst_1 [0] : vector<4x2048xf32> to vector<2048xf32>
    %5 = vector.shape_cast %4 : vector<2048xf32> to vector<1x2048xf32>
    %cst_2 = arith.constant 2.500000e-01 : f32
    %6 = vector.broadcast %cst_2 : f32 to vector<1x2048xf32>
    %7 = arith.mulf %2, %6 : vector<1x2048xf32>
    %cst_3 = arith.constant 4.000000e+00 : f32
    %8 = vector.broadcast %cst_3 : f32 to vector<1x2048xf32>
    %9 = arith.mulf %8, %7 : vector<1x2048xf32>
    %10 = arith.mulf %9, %7 : vector<1x2048xf32>
    %11 = arith.subf %5, %10 : vector<1x2048xf32>
    %cst_4 = arith.constant 0.333333343 : f32
    %12 = vector.broadcast %cst_4 : f32 to vector<1x2048xf32>
    %13 = arith.mulf %11, %12 : vector<1x2048xf32>
    %c0_5 = arith.constant 0 : index
    %c0_6 = arith.constant 0 : index
    %14 = vector.load %arg2[%c0_5, %c0_6] : memref<1x2048xf32, #tpu.memory_space<vmem>>, vector<1x2048xf32>
    tpu.vector_store %arg2[%c0_5, %c0_6], %7 {strides = array<i32>} : memref<1x2048xf32, #tpu.memory_space<vmem>>, vector<1x2048xf32>,
    %c0_7 = arith.constant 0 : index
    %c0_8 = arith.constant 0 : index
    %15 = vector.load %arg3[%c0_7, %c0_8] : memref<1x2048xf32, #tpu.memory_space<vmem>>, vector<1x2048xf32>
    tpu.vector_store %arg3[%c0_7, %c0_8], %13 {strides = array<i32>} : memref<1x2048xf32, #tpu.memory_space<vmem>>, vector<1x2048xf32>,
    return
  }
  func.func @transform_0(%arg0: i32) -> (i32, i32) {
    %c0_i32 = arith.constant 0 : i32
    %c0_i32_0 = arith.constant 0 : i32
    return %c0_i32, %arg0 : i32, i32
  }
  func.func @transform_1(%arg0: i32) -> (i32, i32) {
    %c0_i32 = arith.constant 0 : i32
    %c0_i32_0 = arith.constant 0 : i32
    return %c0_i32, %arg0 : i32, i32
  }
  func.func @transform_2(%arg0: i32) -> (i32, i32) {
    %c0_i32 = arith.constant 0 : i32
    %c0_i32_0 = arith.constant 0 : i32
    return %c0_i32, %arg0 : i32, i32
  }
}

</mosaic_0001>

<bundles_post_ra>
// kernel: tpu_custom_call.1
= control target key start
LH: loop header
LB: loop body
LE: loop exit
PB: predicated region body
PF: predicated region fallthrough
CT: control target
= control target key end

     0   :  { %8 = vsyncpa [#allocation3], 0  ;;  %s1413_s0 = inlined_call_operand.hbm [shape: f32[4,8192], index: 0, kind: input, shape index: {}]   ;;  %s1414_s1 = inlined_call_operand.hbm [shape: f32[1,8192], index: 1, kind: output, shape index: {0}]   ;;  %s1415_s2 = inlined_call_operand.hbm [shape: f32[1,8192], index: 2, kind: output, shape index: {1}]  }
   0x1   :  { %10 = vsyncpa [#allocation3 + $0x1], 0 }
   0x2   :  { %11 = vsyncpa [#allocation4], 0 }
   0x3   :  { %13 = vsyncpa [#allocation4 + $0x1], 0 }
   0x4   :  { %14 = vsyncpa [#allocation7], 0 }
   0x5   :  { %16 = vsyncpa [#allocation7 + $0x1], 0  ;;  %s1052_s9 = smov 0   ;;  %s1054_s10 = smov 0  }
   0x6   :  { %s1056_s11 = smov 0   ;;  %s1058_s12 = smov 0  }
   0x7 LB: > { %s1073_s13 = sadd.s32 4294967295, %s1035_s12   ;;  %s839_s14 = sadd.s32 4294967294, %s1035_s12   ;;  %s1035_s12 = sphi %s1058_s12, %s1424_s12   ;;  %s1031_s11 = sphi %s1056_s11, %s1423_s11   ;;  %s1027_s10 = sphi %s1054_s10, %s1422_s10   ;;  %s1023_s9 = sphi %s1052_s9, %s1421_s9  }
   0x8   : > { %s1077_s15 = sadd.s32 1, %s1035_s12   ;;  %s29_s16 = sadd.s32 1, %s1031_s11 }
   0x9   : > { %s26_s17 = ssub.s32 %s1035_s12, %s1077_s15  ;;  %p36_p0 = scmp.ne.s32.totalorder %s1031_s11, %s1027_s10 }
   0xa   : > { %p27_p1 = scmp.eq.s32.totalorder %s26_s17, 0  ;;  %p37_p2 = scmp.eq.s32.totalorder %s1035_s12, 0 }
   0xb   : > { %p42_p3 = scmp.ne.s32.totalorder %s1027_s10, %s1023_s9  ;;  %p43_p4 = scmp.eq.s32.totalorder %s1073_s13, 0 }
   0xc   : > { %s1089_s18 = scalar_select %p27_p1, %s1031_s11, %s29_s16  }
   0xd   : > { %p1091_p5 = por %p37_p2, %p36_p0  ;;  %p1095_p6 = por %p43_p4, %p42_p3 }
   0xe   : > { %p66_p7 = scmp.eq.s32.totalorder %s1073_s13, 3  ;;  %p72_p8 = scmp.eq.s32.totalorder %s839_s14, 3 }
   0xf   : > { %p873_p9 = scmp.lt.s32.totalorder %s1035_s12, 4  ;;  %s118_s23 = sand.u32 1, %s1031_s11  }
  0x10   : > { %p1101_p10 = por %p66_p7, %p36_p0  ;;  %p1105_p11 = por %p72_p8, %p42_p3 }
  0x11   : > { %s855_s24 = sshll.u32 %s1035_s12, 6  ;;  %s842_s25 = sshll.u32 %s118_s23, 6 }
  0x12   : > { %s127_s28 = scalar_lea.hbm %s1413_s0, %s855_s24  ;;  %s122_s30 = scalar_lea.vmem [#allocation2], %s842_s25 }
  0x13   : > { %s129_s29 = sshll.u32 %s127_s28, 4  ;;  %s131_s3 = sshll.u32 %s122_s30, 4  ;;  %s130_s29 = int_to_ptr.hbm [resolvable:$true] %s129_s29  ;;  %s132_s3 = int_to_ptr.vmem [resolvable:$true] %s131_s3 }
  0x14   : > { %p1116_p12 = pnand %p873_p9, %p1091_p5  ;;  %p845_p13 = scmp.ge.s32.totalorder %s1035_s12, 1 }
  0x15   : > { %p136_p0 = scmp.lt.s32.totalorder %s1035_s12, 5  ;;  %s119_s5 = scalar_lea.sflag [#allocation3], %s118_s23 }
  0x16   : > { %s907_s6 = sshra.s32 %s130_s29, 4  ;;  %p911_p2 = pneg %p1116_p12  ;;  %s908_s6 = int_to_ptr.hbm [resolvable:$true] %s907_s6 }
  0x17   : > { %s909_s7 = scalar_lea.hbm %s908_s6, 64  ;;  %s914_s16 = scalar_lea.hbm %s1413_s0, 256 }
  0x18   : > { %p910_p1 = scmp.ne.s32.totalorder %s908_s6, %s909_s7  ;;  %p915_p5 = scmp.lt.s32.totalorder %s908_s6, %s1413_s0 }
  0x19   : > { %p916_p7 = scmp.lt.s32.totalorder %s914_s16, %s909_s7 }
  0x1a   : > { %p912_p3 = pnand %p911_p2, %p910_p1 }
  0x1b   : > { %p917_p8 = por %p916_p7, %p915_p5 }
  0x1c   : > { %p913_p4 = pneg %p912_p3 }
  0x1e   : > { %p918_p9 = pnand %p917_p8, %p913_p4 }
  0x20   : > { %921 = shalt.err (!%p918_p9)
}
  0x21   : > { %865 = dma.hbm_to_vmem [thread:$0]  (!%p1116_p12), %s130_s29, 1024, %s132_s3, %s119_s5  }
  0x22   : > { %p137_p1 = pnand %p845_p13, %p136_p0 }
  0x23   : > { %s1137_s23 = sand.u32 (!%p137_p1), 1, %s1027_s10  }
  0x24   : > { %140 = sbr.rel (%p137_p1) target bundleno = 152 (0x98), region = 24  ;;  %s846_s24 = sshll.u32 (!%p137_p1), %s1137_s23, 6 }
  0x25   : > { %s143_s25 = scalar_lea.sflag (!%p137_p1), [#allocation3], %s1137_s23  ;;  %s1141_s26 = scalar_lea.vmem (!%p137_p1), [#allocation2], %s846_s24 }
  0x29   : > { %1010 = dma.done.wait (%p1095_p6), %s143_s25, 1024  }
  0x2a   : > { %1012 = vsyncadd (%p1095_p6), %s143_s25, 4294966272  ;;  %v176_v0 = vld [vmem:[%s1141_s26] sm:$0xff]  ;;  %v177_v1 = vld [vmem:[%s1141_s26 + $0x8] sm:$0xff]  ;;  %vm235_vm0 = vcmask 1043456   ;;  %vm629_vm1 = vcmask 1040384   ;;  %vm631_vm2 = vcmask 1042434  }
  0x2b   : > { %v178_v2 = vld [vmem:[%s1141_s26 + $0x10] sm:$0xff]  ;;  %192 = vst [vmem:[#allocation1] ss:$2 sm:$0xff] %v176_v0  ;;  %v179_v3 = vld [vmem:[%s1141_s26 + $0x18] sm:$0xff]  ;;  %v180_v4 = vld [vmem:[%s1141_s26 + $0x20] sm:$0xff]  ;;  %v348_v27 = vmul.f32 %v176_v0, %v176_v0  ;;  %v349_v32 = vmul.f32 %v177_v1, %v177_v1  ;;  %vm633_vm3 = vcmask 1041408  }
  0x2c   : > { %194 = vst [vmem:[#allocation1 + $0x10] ss:$2 sm:$0xff] %v177_v1  ;;  %v181_v9 = vld [vmem:[%s1141_s26 + $0x28] sm:$0xff]  ;;  %v182_v19 = vld [vmem:[%s1141_s26 + $0x30] sm:$0xff]  ;;  %v183_v31 = vld [vmem:[%s1141_s26 + $0x38] sm:$0xff]  ;;  %v350_v37 = vmul.f32 %v178_v2, %v178_v2  ;;  %v351_v46 = vmul.f32 %v179_v3, %v179_v3  ;;  %v1165_v56 = vmul.f32 %v180_v4, %v180_v4  ;;  %vm635_vm4 = vcmask 1044484  }
  0x2d   : > { %196 = vst [vmem:[#allocation1 + $0x20] ss:$2 sm:$0xff] %v178_v2  ;;  %v1167_v57 = vmul.f32 %v181_v9, %v181_v9  ;;  %v1169_v58 = vmul.f32 %v182_v19, %v182_v19  ;;  %v1171_v62 = vmul.f32 %v183_v31, %v183_v31  ;;  %vm637_vm5 = vcmask 1046534   ;;  %s847_s20 = sshll.u32 %s1137_s23, 4  ;;  %s851_s28 = sshll.u32 %s1073_s13, 4 }
  0x2e   : > { %198 = vst [vmem:[#allocation1 + $0x30] ss:$2 sm:$0xff] %v179_v3  ;;  %vm639_vm6 = vcmask 1045508   ;;  %s1247_s27 = scalar_lea.vmem [#allocation5], %s847_s20  ;;  %s717_s3 = scalar_lea.hbm %s1414_s1, %s851_s28 }
  0x2f   : > { %s719_s4 = sshll.u32 %s1247_s27, 4  ;;  %s721_s5 = sshll.u32 %s717_s3, 4  ;;  %s1296_s4 = int_to_ptr.vmem [resolvable:$true] %s719_s4  ;;  %s722_s5 = int_to_ptr.hbm [resolvable:$true] %s721_s5 }
  0x30   : > { %s702_s6 = scalar_lea.sflag [#allocation4], %s1137_s23  ;;  %s951_s7 = sshra.s32 %s722_s5, 4  ;;  %s952_s7 = int_to_ptr.hbm [resolvable:$true] %s951_s7 }
  0x31   : > { %s953_s8 = scalar_lea.hbm %s952_s7, 16  ;;  %s957_s17 = scalar_lea.hbm %s1414_s1, 64 }
  0x32   : > { %v199_v5 = vld.sshfl [vmem:[#allocation1] sm:$0xff pattern:$0x75316420]  ;;  %v200_v6 = vld.sshfl [vmem:[#allocation1 + $0x8] sm:$0xff pattern:$0x75316420]  ;;  %p954_p6 = scmp.ne.s32.totalorder %s952_s7, %s953_s8  ;;  %p958_p0 = scmp.lt.s32.totalorder %s952_s7, %s1414_s1 }
  0x33   : > { %207 = vst [vmem:[#allocation1] ss:$2 sm:$0xff] %v180_v4  ;;  %v236_v7 = vsel %vm235_vm0, %v199_v5, 0.0  ;;  %v243_v8 = vsel %vm235_vm0, %v200_v6, 0.0  ;;  %p959_p2 = scmp.lt.s32.totalorder %s957_s17, %s953_s8 }
  0x34   : > { %v237_v10 = vrot.slane %v236_v7, 4  ;;  %v244_v11 = vrot.slane %v243_v8, 4  ;;  %v201_v12 = vld.sshfl [vmem:[#allocation1 + $0x10] sm:$0xff pattern:$0x75316420]  ;;  %p955_p12 = pnand %p954_p6, %p1101_p10 }
  0x35   : > { %v202_v13 = vld.sshfl [vmem:[#allocation1 + $0x18] sm:$0xff pattern:$0x75316420]  ;;  %v250_v14 = vsel %vm235_vm0, %v201_v12, 0.0  ;;  %p960_p3 = por %p959_p2, %p958_p0 }
  0x36   : > { %v238_v15 = vadd.f32 %v237_v10, %v236_v7  ;;  %v245_v16 = vadd.f32 %v244_v11, %v243_v8  ;;  %208 = vst [vmem:[#allocation1 + $0x10] ss:$2 sm:$0xff] %v181_v9  ;;  %v251_v17 = vrot.slane %v250_v14, 4  ;;  %v257_v18 = vsel %vm235_vm0, %v202_v13, 0.0  ;;  %p956_p13 = pneg %p955_p12 }
  0x37   : > { %v258_v20 = vrot.slane %v257_v18, 4  ;;  %v203_v21 = vld.sshfl [vmem:[#allocation1 + $0x20] sm:$0xff pattern:$0x75316420] }
  0x38   : > { %v239_v22 = vrot.slane %v238_v15, 2  ;;  %v246_v23 = vrot.slane %v245_v16, 2  ;;  %v252_v24 = vadd.f32 %v251_v17, %v250_v14  ;;  %v204_v25 = vld.sshfl [vmem:[#allocation1 + $0x28] sm:$0xff pattern:$0x75316420]  ;;  %v264_v26 = vsel %vm235_vm0, %v203_v21, 0.0  ;;  %p961_p4 = pnand %p960_p3, %p956_p13 }
  0x39   : > { %v259_v28 = vadd.f32 %v258_v20, %v257_v18  ;;  %209 = vst [vmem:[#allocation1 + $0x20] ss:$2 sm:$0xff] %v182_v19  ;;  %v265_v29 = vrot.slane %v264_v26, 4  ;;  %v271_v30 = vsel %vm235_vm0, %v204_v25, 0.0 }
  0x3a   : > { %v247_v33 = vadd.f32 %v246_v23, %v245_v16  ;;  %v253_v34 = vrot.slane %v252_v24, 2  ;;  %v272_v35 = vrot.slane %v271_v30, 4  ;;  %v205_v36 = vld.sshfl [vmem:[#allocation1 + $0x30] sm:$0xff pattern:$0x75316420]  ;;  %v1162_v42 = vadd.f32 %v239_v22, %v238_v15 }
  0x3b   : > { %v260_v38 = vrot.slane %v259_v28, 2  ;;  %v266_v39 = vadd.f32 %v265_v29, %v264_v26  ;;  %v206_v40 = vld.sshfl [vmem:[#allocation1 + $0x38] sm:$0xff pattern:$0x75316420]  ;;  %v278_v41 = vsel %vm235_vm0, %v205_v36, 0.0 }
  0x3c   : > { %v254_v43 = vadd.f32 %v253_v34, %v252_v24  ;;  %v273_v44 = vadd.f32 %v272_v35, %v271_v30  ;;  %210 = vst [vmem:[#allocation1 + $0x30] ss:$2 sm:$0xff] %v183_v31  ;;  %v279_v45 = vrot.slane %v278_v41, 4  ;;  %v248_v47 = vrot.slane %v247_v33, 1 }
  0x3d   : > { %v267_v48 = vrot.slane %v266_v39, 2  ;;  %v285_v49 = vsel %vm235_vm0, %v206_v40, 0.0  ;;  %v211_v50 = vld.sshfl [vmem:[#allocation1] sm:$0xff pattern:$0x75316420]  ;;  %v261_v52 = vadd.f32 %v260_v38, %v259_v28  ;;  %v241_v0 = vrot.slane %v1162_v42, 1 }
  0x3e   : > { %v255_v51 = vrot.slane %v254_v43, 1  ;;  %v274_v53 = vrot.slane %v273_v44, 2  ;;  %v280_v54 = vadd.f32 %v279_v45, %v278_v41  ;;  %v212_v55 = vld.sshfl [vmem:[#allocation1 + $0x8] sm:$0xff pattern:$0x75316420]  ;;  %v286_v59 = vrot.slane %v285_v49, 4 }
  0x3f   : > { %364 = vst [vmem:[#allocation1] ss:$2 sm:$0xff] %v348_v27  ;;  %v268_v60 = vadd.f32 %v267_v48, %v266_v39  ;;  %v213_v63 = vld.sshfl [vmem:[#allocation1 + $0x10] sm:$0xff pattern:$0x75316420]  ;;  %v1174_v1 = vadd.f32 %v248_v47, %v247_v33  ;;  %v1177_v3 = vsel %vm235_vm0, %v211_v50, 0.0 }
  0x40   : > { %v281_v61 = vrot.slane %v280_v54, 2  ;;  %v287_v2 = vadd.f32 %v286_v59, %v285_v49  ;;  %v299_v4 = vsel %vm235_vm0, %v212_v55, 0.0  ;;  %v214_v5 = vld.sshfl [vmem:[#allocation1 + $0x18] sm:$0xff pattern:$0x75316420]  ;;  %v1180_v6 = vadd.f32 %v255_v51, %v254_v43 }
  0x41   : > { %v262_v7 = vrot.slane %v261_v52, 1  ;;  %v275_v8 = vadd.f32 %v274_v53, %v273_v44  ;;  %v300_v9 = vrot.slane %v299_v4, 4  ;;  %366 = vst [vmem:[#allocation1 + $0x10] ss:$2 sm:$0xff] %v349_v32  ;;  %v306_v12 = vsel %vm235_vm0, %v213_v63, 0.0 }
  0x42   : > { %v282_v10 = vadd.f32 %v281_v61, %v280_v54  ;;  %v288_v11 = vrot.slane %v287_v2, 2  ;;  %v313_v13 = vsel %vm235_vm0, %v214_v5, 0.0  ;;  %v215_v14 = vld.sshfl [vmem:[#allocation1 + $0x20] sm:$0xff pattern:$0x75316420]  ;;  %v269_v15 = vrot.slane %v268_v60, 1 }
  0x43   : > { %v293_v16 = vrot.slane %v1177_v3, 4  ;;  %v301_v17 = vadd.f32 %v300_v9, %v299_v4  ;;  %v307_v18 = vrot.slane %v306_v12, 4  ;;  %v216_v19 = vld.sshfl [vmem:[#allocation1 + $0x28] sm:$0xff pattern:$0x75316420]  ;;  %v314_v21 = vrot.slane %v313_v13, 4 }
  0x44   : > { %v289_v20 = vadd.f32 %v288_v11, %v287_v2  ;;  %v320_v22 = vsel %vm235_vm0, %v215_v14, 0.0  ;;  %v327_v23 = vsel %vm235_vm0, %v216_v19, 0.0  ;;  %368 = vst [vmem:[#allocation1 + $0x20] ss:$2 sm:$0xff] %v350_v37  ;;  %v263_v24 = vadd.f32 %v262_v7, %v261_v52 }
  0x45   : > { %v276_v25 = vrot.slane %v275_v8, 1  ;;  %v308_v26 = vadd.f32 %v307_v18, %v306_v12  ;;  %v321_v27 = vrot.slane %v320_v22, 4  ;;  %v217_v28 = vld.sshfl [vmem:[#allocation1 + $0x30] sm:$0xff pattern:$0x75316420]  ;;  %v283_v29 = vrot.slane %v282_v10, 1 }
  0x46   : > { %v315_v30 = vadd.f32 %v314_v21, %v313_v13  ;;  %v328_v31 = vrot.slane %v327_v23, 4  ;;  %v218_v32 = vld.sshfl [vmem:[#allocation1 + $0x38] sm:$0xff pattern:$0x75316420]  ;;  %v334_v33 = vsel %vm235_vm0, %v217_v28, 0.0  ;;  %v270_v34 = vadd.f32 %v269_v15, %v268_v60 }
  0x47   : > { %v290_v35 = vrot.slane %v289_v20, 1  ;;  %v322_v36 = vadd.f32 %v321_v27, %v320_v22  ;;  %v335_v38 = vrot.slane %v334_v33, 4  ;;  %370 = vst [vmem:[#allocation1 + $0x30] ss:$2 sm:$0xff] %v351_v46  ;;  %v302_v39 = vrot.slane %v301_v17, 2 }
  0x48   : > { %v309_v37 = vrot.slane %v308_v26, 2  ;;  %v329_v40 = vadd.f32 %v328_v31, %v327_v23  ;;  %v341_v41 = vsel %vm235_vm0, %v218_v32, 0.0  ;;  %v1189_v43 = vld.sshfl [vmem:[#allocation1] sm:$0xff pattern:$0x75316420]  ;;  %v316_v44 = vrot.slane %v315_v30, 2 }
  0x49   : > { %v323_v45 = vrot.slane %v322_v36, 2  ;;  %v336_v47 = vadd.f32 %v335_v38, %v334_v33  ;;  %v342_v48 = vrot.slane %v341_v41, 4  ;;  %v1191_v49 = vld.sshfl [vmem:[#allocation1 + $0x8] sm:$0xff pattern:$0x75316420]  ;;  %v277_v46 = vadd.f32 %v276_v25, %v275_v8 }
  0x4a   : > { %v284_v50 = vadd.f32 %v283_v29, %v282_v10  ;;  %v330_v51 = vrot.slane %v329_v40, 2  ;;  %379 = vst [vmem:[#allocation1] ss:$2 sm:$0xff] %v1165_v56  ;;  %v1194_v52 = vld.sshfl [vmem:[#allocation1 + $0x10] sm:$0xff pattern:$0x75316420]  ;;  %v242_v53 = vadd.f32 %v241_v0, %v1162_v42  ;;  %v291_v54 = vadd.f32 %v290_v35, %v289_v20 }
  0x4b   : > { %v337_v55 = vrot.slane %v336_v47, 2  ;;  %v343_v59 = vadd.f32 %v342_v48, %v341_v41  ;;  %v1197_v60 = vld.sshfl [vmem:[#allocation1 + $0x18] sm:$0xff pattern:$0x75316420]  ;;  %v1201_v61 = vmul.f32 0.25, %v1174_v1  ;;  %v294_v63 = vadd.f32 %v293_v16, %v1177_v3 }
  0x4c   : > { %v303_v2 = vadd.f32 %v302_v39, %v301_v17  ;;  %v310_v4 = vadd.f32 %v309_v37, %v308_v26  ;;  %380 = vst [vmem:[#allocation1 + $0x10] ss:$2 sm:$0xff] %v1167_v57  ;;  %v1205_v56 = vld.sshfl [vmem:[#allocation1 + $0x20] sm:$0xff pattern:$0x75316420]  ;;  %v1207_v5 = vmul.f32 0.25, %v242_v53  ;;  %v317_v42 = vadd.f32 %v316_v44, %v315_v30 }
  0x4d   : > { %v344_v0 = vrot.slane %v343_v59, 2  ;;  %v1209_v7 = vld.sshfl [vmem:[#allocation1 + $0x28] sm:$0xff pattern:$0x75316420]  ;;  %v1212_v8 = vmul.f32 0.25, %v1180_v6  ;;  %v1214_v9 = vmul.f32 0.25, %v263_v24  ;;  %v324_v1 = vadd.f32 %v323_v45, %v322_v36 }
  0x4e   : > { %v331_v10 = vadd.f32 %v330_v51, %v329_v40  ;;  %v338_v3 = vadd.f32 %v337_v55, %v336_v47  ;;  %381 = vst [vmem:[#allocation1 + $0x20] ss:$2 sm:$0xff] %v1169_v58  ;;  %v1217_v11 = vld.sshfl [vmem:[#allocation1 + $0x30] sm:$0xff pattern:$0x75316420]  ;;  %v1219_v57 = vmul.f32 0.25, %v270_v34 }
  0x4f   : > { %v345_v12 = vadd.f32 %v344_v0, %v343_v59  ;;  %v1221_v13 = vld.sshfl [vmem:[#allocation1 + $0x38] sm:$0xff pattern:$0x75316420]  ;;  %v1223_v14 = vmul.f32 0.25, %v277_v46  ;;  %v1225_v15 = vmul.f32 0.25, %v284_v50  ;;  %v1227_v6 = vmul.f32 0.25, %v291_v54 }
  0x50   : > { %382 = vst [vmem:[#allocation1 + $0x30] ss:$2 sm:$0xff] %v1171_v62  ;;  %v615_v16 = vrot.slane %v1201_v61, 7  ;;  %v616_v17 = vrot.slane %v1212_v8, 6  ;;  %v617_v58 = vrot.slane %v1214_v9, 5  ;;  %v618_v18 = vrot.slane %v1219_v57, 4 }
  0x51   : > { %v619_v19 = vrot.slane %v1223_v14, 3  ;;  %v620_v20 = vrot.slane %v1225_v15, 2  ;;  %v621_v21 = vrot.slane %v1227_v6, 1  ;;  %v295_v22 = vrot.slane %v294_v63, 2 }
  0x52   : > { %v630_v23 = vsel %vm629_vm1, %v1207_v5, %v615_v16  ;;  %v632_v62 = vsel %vm631_vm2, %v616_v17, %v617_v58  ;;  %v304_v24 = vrot.slane %v303_v2, 1  ;;  %v311_v25 = vrot.slane %v310_v4, 1 }
  0x53   : > { %v634_v26 = vsel %vm633_vm3, %v630_v23, %v632_v62  ;;  %v636_v27 = vsel %vm635_vm4, %v618_v18, %v619_v19  ;;  %v638_v28 = vsel %vm637_vm5, %v620_v20, %v621_v21  ;;  %v296_v29 = vadd.f32 %v295_v22, %v294_v63 }
  0x54   : > { %v640_v30 = vsel %vm639_vm6, %v636_v27, %v638_v28  ;;  %v305_v31 = vadd.f32 %v304_v24, %v303_v2  ;;  %v312_v32 = vadd.f32 %v311_v25, %v310_v4  ;;  %v318_v33 = vrot.slane %v317_v42, 1 }
  0x55   : > { %v641_v34 = vsel %vm235_vm0, %v634_v26, %v640_v30  ;;  %v297_v35 = vrot.slane %v296_v29, 1  ;;  %v325_v36 = vrot.slane %v324_v1, 1  ;;  %v332_v38 = vrot.slane %v331_v10, 1 }
  0x56   : > { %651 = vst [vmem:[%s1247_s27] sm:$0xff] %v641_v34  ;;  %v319_v39 = vadd.f32 %v318_v33, %v317_v42  ;;  %v339_v37 = vrot.slane %v338_v3, 1  ;;  %v346_v40 = vrot.slane %v345_v12, 1  ;;  %v1250_v41 = vmul.f32 0.25, %v305_v31 }
  0x57   : > { %v298_v44 = vadd.f32 %v297_v35, %v296_v29  ;;  %v326_v45 = vadd.f32 %v325_v36, %v324_v1  ;;  %v333_v47 = vadd.f32 %v332_v38, %v331_v10  ;;  %v1253_v48 = vmul.f32 0.25, %v312_v32 }
  0x58   : > { %v340_v46 = vadd.f32 %v339_v37, %v338_v3  ;;  %v347_v50 = vadd.f32 %v346_v40, %v345_v12  ;;  %v1255_v51 = vmul.f32 0.25, %v319_v39  ;;  %v622_v53 = vrot.slane %v1250_v41, 7 }
  0x59   : > { %v1258_v54 = vmul.f32 0.25, %v298_v44  ;;  %v1260_v55 = vmul.f32 0.25, %v326_v45  ;;  %v1262_v59 = vmul.f32 0.25, %v333_v47  ;;  %v623_v63 = vrot.slane %v1253_v48, 6 }
  0x5a   : > { %v1270_v2 = vmul.f32 0.25, %v340_v46  ;;  %v1272_v4 = vmul.f32 0.25, %v347_v50  ;;  %v624_v42 = vrot.slane %v1255_v51, 5  ;;  %v407_v0 = vsel %vm235_vm0, %v1189_v43, 0.0 }
  0x5b   : > { %v625_v1 = vrot.slane %v1260_v55, 4  ;;  %v626_v10 = vrot.slane %v1262_v59, 3  ;;  %v642_v3 = vsel %vm629_vm1, %v1258_v54, %v622_v53  ;;  %v408_v12 = vrot.slane %v407_v0, 4 }
  0x5c   : > { %v627_v16 = vrot.slane %v1270_v2, 2  ;;  %v628_v17 = vrot.slane %v1272_v4, 1  ;;  %v643_v58 = vsel %vm631_vm2, %v623_v63, %v624_v42  ;;  %v414_v18 = vsel %vm235_vm0, %v1191_v49, 0.0 }
  0x5d   : > { %v644_v43 = vsel %vm633_vm3, %v642_v3, %v643_v58  ;;  %v645_v19 = vsel %vm635_vm4, %v625_v1, %v626_v10  ;;  %v409_v20 = vadd.f32 %v408_v12, %v407_v0  ;;  %v415_v21 = vrot.slane %v414_v18, 4 }
  0x5e   : > { %v646_v22 = vsel %vm637_vm5, %v627_v16, %v628_v17  ;;  %v421_v23 = vsel %vm235_vm0, %v1194_v52, 0.0  ;;  %v428_v62 = vsel %vm235_vm0, %v1197_v60, 0.0  ;;  %v435_v24 = vsel %vm235_vm0, %v1205_v56, 0.0 }
  0x5f   : > { %v647_v49 = vsel %vm639_vm6, %v645_v19, %v646_v22  ;;  %v410_v25 = vrot.slane %v409_v20, 2  ;;  %v416_v26 = vadd.f32 %v415_v21, %v414_v18  ;;  %v422_v27 = vrot.slane %v421_v23, 4 }
  0x60   : > { %v648_v28 = vsel %vm235_vm0, %v644_v43, %v647_v49  ;;  %v429_v29 = vrot.slane %v428_v62, 4  ;;  %v436_v30 = vrot.slane %v435_v24, 4  ;;  %v442_v52 = vsel %vm235_vm0, %v1209_v7, 0.0 }
  0x61   : > { %652 = vst [vmem:[%s1247_s27 + $0x8] sm:$0xff] %v648_v28  ;;  %v411_v60 = vadd.f32 %v410_v25, %v409_v20  ;;  %v417_v56 = vrot.slane %v416_v26, 2  ;;  %v423_v31 = vadd.f32 %v422_v27, %v421_v23  ;;  %v443_v32 = vrot.slane %v442_v52, 4 }
  0x62   : > { %v430_v33 = vadd.f32 %v429_v29, %v428_v62  ;;  %v437_v34 = vadd.f32 %v436_v30, %v435_v24  ;;  %v449_v35 = vsel %vm235_vm0, %v1217_v11, 0.0  ;;  %v456_v36 = vsel %vm235_vm0, %v1221_v13, 0.0 }
  0x63   : > { %964 = shalt.err (!%p961_p4)
}
  0x64   : > { %858 = dma.vmem_to_hbm [thread:$0]  (%p1101_p10), %s1296_s4, 256, %s722_s5, %s702_s6   ;;  %v412_v7 = vrot.slane %v411_v60, 1  ;;  %v418_v11 = vadd.f32 %v417_v56, %v416_v26  ;;  %v424_v13 = vrot.slane %v423_v31, 2  ;;  %v444_v38 = vadd.f32 %v443_v32, %v442_v52 }
  0x65   : > { %v431_v39 = vrot.slane %v430_v33, 2  ;;  %v438_v37 = vrot.slane %v437_v34, 2  ;;  %v450_v40 = vrot.slane %v449_v35, 4  ;;  %v457_v44 = vrot.slane %v456_v36, 4  ;;  %s1348_s25 = scalar_lea.vmem [#allocation6], %s847_s20  ;;  %s731_s27 = scalar_lea.hbm %s1415_s2, %s851_s28 }
  0x66   : > { %v413_v45 = vadd.f32 %v412_v7, %v411_v60  ;;  %v419_v47 = vrot.slane %v418_v11, 1  ;;  %v425_v46 = vadd.f32 %v424_v13, %v423_v31  ;;  %v445_v50 = vrot.slane %v444_v38, 2  ;;  %s733_s29 = sshll.u32 %s1348_s25, 4  ;;  %s735_s30 = sshll.u32 %s731_s27, 4  ;;  %s734_s29 = int_to_ptr.vmem [resolvable:$true] %s733_s29  ;;  %s736_s30 = int_to_ptr.hbm [resolvable:$true] %s735_s30 }
  0x67   : > { %v432_v53 = vadd.f32 %v431_v39, %v430_v33  ;;  %v439_v63 = vadd.f32 %v438_v37, %v437_v34  ;;  %v451_v42 = vadd.f32 %v450_v40, %v449_v35  ;;  %v458_v0 = vadd.f32 %v457_v44, %v456_v36  ;;  %v383_v40 = vld.sshfl [vmem:[#allocation1] sm:$0xff pattern:$0x75316420]  ;;  %s707_s13 = scalar_lea.sflag [#allocation7], %s1137_s23  ;;  %s979_s28 = sshra.s32 %s736_s30, 4  ;;  %s980_s28 = int_to_ptr.hbm [resolvable:$true] %s979_s28 }
  0x68   : > { %v420_v1 = vadd.f32 %v419_v47, %v418_v11  ;;  %v426_v10 = vrot.slane %v425_v46, 1  ;;  %v446_v3 = vadd.f32 %v445_v50, %v444_v38  ;;  %v535_v12 = vmul.f32 4.0, %v1207_v5  ;;  %s981_s3 = scalar_lea.hbm %s980_s28, 16  ;;  %s985_s6 = scalar_lea.hbm %s1415_s2, 64 }
  0x69   : > { %v433_v16 = vrot.slane %v432_v53, 1  ;;  %v440_v17 = vrot.slane %v439_v63, 1  ;;  %v452_v58 = vrot.slane %v451_v42, 2  ;;  %v459_v18 = vrot.slane %v458_v0, 2  ;;  %p982_p5 = scmp.ne.s32.totalorder %s980_s28, %s981_s3  ;;  %p986_p9 = scmp.lt.s32.totalorder %s980_s28, %s1415_s2 }
  0x6a   : > { %v427_v43 = vadd.f32 %v426_v10, %v425_v46  ;;  %v447_v19 = vrot.slane %v446_v3, 1  ;;  %v536_v20 = vmul.f32 4.0, %v1201_v61  ;;  %v537_v21 = vmul.f32 4.0, %v1212_v8  ;;  %v384_v46 = vld.sshfl [vmem:[#allocation1 + $0x8] sm:$0xff pattern:$0x75316420]  ;;  %p987_p1 = scmp.lt.s32.totalorder %s985_s6, %s981_s3 }
  0x6b   : > { %v434_v22 = vadd.f32 %v433_v16, %v432_v53  ;;  %v441_v23 = vadd.f32 %v440_v17, %v439_v63  ;;  %v453_v62 = vadd.f32 %v452_v58, %v451_v42  ;;  %v460_v24 = vadd.f32 %v459_v18, %v458_v0  ;;  %v385_v42 = vld.sshfl [vmem:[#allocation1 + $0x10] sm:$0xff pattern:$0x75316420]  ;;  %v387_v17 = vld.sshfl [vmem:[#allocation1 + $0x20] sm:$0xff pattern:$0x75316420]  ;;  %p983_p7 = pnand %p982_p5, %p1101_p10 }
  0x6c   : > { %v448_v49 = vadd.f32 %v447_v19, %v446_v3  ;;  %v538_v25 = vmul.f32 4.0, %v1214_v9  ;;  %v539_v26 = vmul.f32 4.0, %v1219_v57  ;;  %v540_v27 = vmul.f32 4.0, %v1223_v14  ;;  %v388_v19 = vld.sshfl [vmem:[#allocation1 + $0x28] sm:$0xff pattern:$0x75316420]  ;;  %p988_p6 = por %p987_p1, %p986_p9 }
  0x6d   : > { %v454_v28 = vrot.slane %v453_v62, 1  ;;  %v461_v29 = vrot.slane %v460_v24, 1  ;;  %v541_v30 = vmul.f32 4.0, %v1225_v15  ;;  %v542_v52 = vmul.f32 4.0, %v1227_v6  ;;  %p984_p8 = pneg %p983_p7 }
  0x6e   : > { %v551_v60 = vmul.f32 %v535_v12, %v1207_v5  ;;  %v552_v56 = vmul.f32 %v536_v20, %v1201_v61  ;;  %v553_v31 = vmul.f32 %v537_v21, %v1212_v8  ;;  %v554_v32 = vmul.f32 %v538_v25, %v1214_v9 }
  0x6f   : > { %v455_v33 = vadd.f32 %v454_v28, %v453_v62  ;;  %v462_v34 = vadd.f32 %v461_v29, %v460_v24  ;;  %v555_v35 = vmul.f32 %v539_v26, %v1219_v57  ;;  %v556_v36 = vmul.f32 %v540_v27, %v1223_v14  ;;  %v389_v24 = vld.sshfl [vmem:[#allocation1 + $0x30] sm:$0xff pattern:$0x75316420]  ;;  %p989_p12 = pnand %p988_p6, %p984_p8 }
  0x70   : > { %v557_v7 = vmul.f32 %v541_v30, %v1225_v15  ;;  %v558_v11 = vmul.f32 %v542_v52, %v1227_v6  ;;  %v567_v13 = vsub.f32 %v413_v45, %v551_v60  ;;  %v568_v38 = vsub.f32 %v420_v1, %v552_v56  ;;  %v386_v6 = vld.sshfl [vmem:[#allocation1 + $0x18] sm:$0xff pattern:$0x75316420] }
  0x71   : > { %v569_v39 = vsub.f32 %v427_v43, %v553_v31  ;;  %v570_v5 = vsub.f32 %v434_v22, %v554_v32  ;;  %v571_v37 = vsub.f32 %v441_v23, %v555_v35  ;;  %v572_v61 = vsub.f32 %v448_v49, %v556_v36  ;;  %v390_v30 = vld.sshfl [vmem:[#allocation1 + $0x38] sm:$0xff pattern:$0x75316420] }
  0x72   : > { %v573_v8 = vsub.f32 %v455_v33, %v557_v7  ;;  %v574_v44 = vsub.f32 %v462_v34, %v558_v11  ;;  %v583_v9 = vmul.f32 0.33333334, %v567_v13  ;;  %v584_v47 = vmul.f32 0.33333334, %v568_v38 }
  0x73   : > { %v585_v50 = vmul.f32 0.33333334, %v569_v39  ;;  %v586_v57 = vmul.f32 0.33333334, %v570_v5  ;;  %v587_v53 = vmul.f32 0.33333334, %v571_v37 }
  0x74   : > { %v588_v14 = vmul.f32 0.33333334, %v572_v61  ;;  %v589_v63 = vmul.f32 0.33333334, %v573_v8  ;;  %v590_v15 = vmul.f32 0.33333334, %v574_v44 }
  0x75   : > { %v669_v45 = vrot.slane %v584_v47, 7  ;;  %v670_v0 = vrot.slane %v585_v50, 6  ;;  %v671_v1 = vrot.slane %v586_v57, 5  ;;  %v672_v10 = vrot.slane %v587_v53, 4 }
  0x76   : > { %v673_v3 = vrot.slane %v588_v14, 3  ;;  %v674_v12 = vrot.slane %v589_v63, 2  ;;  %v675_v16 = vrot.slane %v590_v15, 1  ;;  %v463_v58 = vsel %vm235_vm0, %v383_v40, 0.0 }
  0x77   : > { %v683_v18 = vsel %vm629_vm1, %v583_v9, %v669_v45  ;;  %v684_v43 = vsel %vm631_vm2, %v670_v0, %v671_v1  ;;  %v464_v20 = vrot.slane %v463_v58, 4  ;;  %v470_v21 = vsel %vm235_vm0, %v384_v46, 0.0 }
  0x78   : > { %v685_v22 = vsel %vm633_vm3, %v683_v18, %v684_v43  ;;  %v686_v23 = vsel %vm635_vm4, %v672_v10, %v673_v3  ;;  %v687_v62 = vsel %vm637_vm5, %v674_v12, %v675_v16  ;;  %v471_v49 = vrot.slane %v470_v21, 4 }
  0x79   : > { %v688_v25 = vsel %vm639_vm6, %v686_v23, %v687_v62  ;;  %v465_v26 = vadd.f32 %v464_v20, %v463_v58  ;;  %v477_v27 = vsel %vm235_vm0, %v385_v42, 0.0  ;;  %v484_v28 = vsel %vm235_vm0, %v386_v6, 0.0 }
  0x7a   : > { %v689_v29 = vsel %vm235_vm0, %v685_v22, %v688_v25  ;;  %v472_v52 = vadd.f32 %v471_v49, %v470_v21  ;;  %v478_v60 = vrot.slane %v477_v27, 4  ;;  %v485_v56 = vrot.slane %v484_v28, 4 }
  0x7b   : > { %699 = vst [vmem:[%s1348_s25] sm:$0xff] %v689_v29  ;;  %v466_v31 = vrot.slane %v465_v26, 2  ;;  %v491_v32 = vsel %vm235_vm0, %v387_v17, 0.0  ;;  %v498_v33 = vsel %vm235_vm0, %v388_v19, 0.0  ;;  %v505_v34 = vsel %vm235_vm0, %v389_v24, 0.0 }
  0x7c   : > { %v473_v35 = vrot.slane %v472_v52, 2  ;;  %v479_v36 = vadd.f32 %v478_v60, %v477_v27  ;;  %v486_v7 = vadd.f32 %v485_v56, %v484_v28  ;;  %v492_v11 = vrot.slane %v491_v32, 4 }
  0x7d   : > { %v467_v13 = vadd.f32 %v466_v31, %v465_v26  ;;  %v499_v38 = vrot.slane %v498_v33, 4  ;;  %v506_v39 = vrot.slane %v505_v34, 4  ;;  %v512_v5 = vsel %vm235_vm0, %v390_v30, 0.0 }
  0x7e   : > { %v474_v37 = vadd.f32 %v473_v35, %v472_v52  ;;  %v480_v61 = vrot.slane %v479_v36, 2  ;;  %v487_v40 = vrot.slane %v486_v7, 2  ;;  %v493_v8 = vadd.f32 %v492_v11, %v491_v32 }
  0x7f   : > { %v468_v44 = vrot.slane %v467_v13, 1  ;;  %v500_v9 = vadd.f32 %v499_v38, %v498_v33  ;;  %v507_v47 = vadd.f32 %v506_v39, %v505_v34  ;;  %v513_v46 = vrot.slane %v512_v5, 4 }
  0x80   : > { %v475_v50 = vrot.slane %v474_v37, 1  ;;  %v481_v57 = vadd.f32 %v480_v61, %v479_v36  ;;  %v488_v53 = vadd.f32 %v487_v40, %v486_v7  ;;  %v494_v14 = vrot.slane %v493_v8, 2 }
  0x81   : > { %v469_v63 = vadd.f32 %v468_v44, %v467_v13  ;;  %v501_v15 = vrot.slane %v500_v9, 2  ;;  %v508_v42 = vrot.slane %v507_v47, 2  ;;  %v514_v6 = vadd.f32 %v513_v46, %v512_v5 }
  0x82   : > { %v476_v45 = vadd.f32 %v475_v50, %v474_v37  ;;  %v482_v0 = vrot.slane %v481_v57, 1  ;;  %v489_v1 = vrot.slane %v488_v53, 1  ;;  %v495_v10 = vadd.f32 %v494_v14, %v493_v8 }
  0x83   : > { %v502_v3 = vadd.f32 %v501_v15, %v500_v9  ;;  %v509_v12 = vadd.f32 %v508_v42, %v507_v47  ;;  %v515_v16 = vrot.slane %v514_v6, 2  ;;  %v543_v17 = vmul.f32 4.0, %v1258_v54 }
  0x84   : > { %v483_v58 = vadd.f32 %v482_v0, %v481_v57  ;;  %v490_v18 = vadd.f32 %v489_v1, %v488_v53  ;;  %v496_v43 = vrot.slane %v495_v10, 1  ;;  %v544_v19 = vmul.f32 4.0, %v1250_v41 }
  0x85   : > { %v503_v20 = vrot.slane %v502_v3, 1  ;;  %v510_v21 = vrot.slane %v509_v12, 1  ;;  %v516_v22 = vadd.f32 %v515_v16, %v514_v6  ;;  %v545_v23 = vmul.f32 4.0, %v1253_v48 }
  0x86   : > { %v497_v62 = vadd.f32 %v496_v43, %v495_v10  ;;  %v546_v24 = vmul.f32 4.0, %v1255_v51  ;;  %v547_v49 = vmul.f32 4.0, %v1260_v55  ;;  %v548_v25 = vmul.f32 4.0, %v1262_v59 }
  0x87   : > { %v504_v26 = vadd.f32 %v503_v20, %v502_v3  ;;  %v511_v27 = vadd.f32 %v510_v21, %v509_v12  ;;  %v517_v28 = vrot.slane %v516_v22, 1  ;;  %v549_v29 = vmul.f32 4.0, %v1270_v2 }
  0x88   : > { %v550_v30 = vmul.f32 4.0, %v1272_v4  ;;  %v559_v52 = vmul.f32 %v543_v17, %v1258_v54  ;;  %v560_v60 = vmul.f32 %v544_v19, %v1250_v41  ;;  %v561_v56 = vmul.f32 %v545_v23, %v1253_v48 }
  0x89   : > { %v518_v31 = vadd.f32 %v517_v28, %v516_v22  ;;  %v562_v32 = vmul.f32 %v546_v24, %v1255_v51  ;;  %v563_v33 = vmul.f32 %v547_v49, %v1260_v55  ;;  %v564_v34 = vmul.f32 %v548_v25, %v1262_v59 }
  0x8a   : > { %v565_v35 = vmul.f32 %v549_v29, %v1270_v2  ;;  %v566_v36 = vmul.f32 %v550_v30, %v1272_v4  ;;  %v575_v7 = vsub.f32 %v469_v63, %v559_v52  ;;  %v576_v11 = vsub.f32 %v476_v45, %v560_v60 }
  0x8b   : > { %v577_v54 = vsub.f32 %v483_v58, %v561_v56  ;;  %v578_v13 = vsub.f32 %v490_v18, %v562_v32  ;;  %v579_v41 = vsub.f32 %v497_v62, %v563_v33  ;;  %v580_v38 = vsub.f32 %v504_v26, %v564_v34 }
  0x8c   : > { %v581_v48 = vsub.f32 %v511_v27, %v565_v35  ;;  %v582_v39 = vsub.f32 %v518_v31, %v566_v36  ;;  %v591_v5 = vmul.f32 0.33333334, %v575_v7  ;;  %v592_v51 = vmul.f32 0.33333334, %v576_v11 }
  0x8d   : > { %v593_v37 = vmul.f32 0.33333334, %v577_v54  ;;  %v594_v55 = vmul.f32 0.33333334, %v578_v13  ;;  %v595_v61 = vmul.f32 0.33333334, %v579_v41 }
  0x8e   : > { %v596_v59 = vmul.f32 0.33333334, %v580_v38  ;;  %v597_v2 = vmul.f32 0.33333334, %v581_v48  ;;  %v598_v4 = vmul.f32 0.33333334, %v582_v39 }
  0x8f   : > { %v676_v40 = vrot.slane %v592_v51, 7  ;;  %v677_v8 = vrot.slane %v593_v37, 6  ;;  %v678_v44 = vrot.slane %v594_v55, 5  ;;  %v679_v9 = vrot.slane %v595_v61, 4 }
  0x90   : > { %v680_v47 = vrot.slane %v596_v59, 3  ;;  %v681_v46 = vrot.slane %v597_v2, 2  ;;  %v682_v50 = vrot.slane %v598_v4, 1 }
  0x91   : > { %v690_v57 = vsel %vm629_vm1, %v591_v5, %v676_v40  ;;  %v691_v53 = vsel %vm631_vm2, %v677_v8, %v678_v44 }
  0x92   : > { %v692_v14 = vsel %vm633_vm3, %v690_v57, %v691_v53  ;;  %v693_v63 = vsel %vm635_vm4, %v679_v9, %v680_v47  ;;  %v694_v15 = vsel %vm637_vm5, %v681_v46, %v682_v50 }
  0x93   : > { %v695_v42 = vsel %vm639_vm6, %v693_v63, %v694_v15 }
  0x94   : > { %v696_v6 = vsel %vm235_vm0, %v692_v14, %v695_v42 }
  0x95   : > { %700 = vst [vmem:[%s1348_s25 + $0x8] sm:$0xff] %v696_v6 }
  0x96   : > { %992 = shalt.err (!%p989_p12)
}
  0x97   : > { %859 = dma.vmem_to_hbm [thread:$0]  (%p1101_p10), %s734_s29, 256, %s736_s30, %s707_s13  }
  0x98 PF: > { %p874_p13 = scmp.ge.s32.totalorder %s1035_s12, 2  ;;  %s747_s23 = sand.u32 1, %s1023_s9  }
  0x99   : > { %s748_s14 = scalar_lea.sflag [#allocation4], %s747_s23 }
  0x9a   : > { %p867_p0 = pnand %p874_p13, %p1105_p11 }
  0x9c   : > { %p868_p2 = pneg %p867_p0 }
  0x9e   : > { %1014 = dma.done.wait (%p868_p2), %s748_s14, 256  }
  0x9f   : > { %1016 = vsyncadd (%p868_p2), %s748_s14, 4294967040  ;;  %s758_s16 = scalar_lea.sflag [#allocation7], %s747_s23 }
  0xa0   : > { %1018 = dma.done.wait (%p868_p2), %s758_s16, 256  }
  0xa1   : > { %1020 = vsyncadd (%p868_p2), %s758_s16, 4294967040  ;;  %p19_p10 = scmp.ge.s32.totalorder %s1077_s15, 6   ;;  %s1421_s9 = smov %s1027_s10 }
  0xa2   : > { %s1422_s10 = smov %s1031_s11  ;;  %s1423_s11 = smov %s1089_s18 }
  0xa3   : > { %s1424_s12 = smov %s1077_s15  ;;  %21 = sbr.rel (!%p19_p10) target bundleno = 7 (0x7), region = 92 }
  0xa8   :  { %764 = vsyncpa [#allocation3], 1 }
  0xa9   :  { %766 = vsyncpa [#allocation3 + $0x1], 1 }
  0xaa   :  { %767 = vsyncpa [#allocation4], 1 }
  0xab   :  { %769 = vsyncpa [#allocation4 + $0x1], 1 }
  0xac   :  { %770 = vsyncpa [#allocation7], 1 }
  0xad   :  { %772 = vsyncpa [#allocation7 + $0x1], 1 }

</bundles_post_ra>
